<compile_context>
chip_gen: v6e
topology: v6e:2x2x1
jax: 0.10.0
libtpu: 0.0.40
codegen_flags: <defaults>
</compile_context>

<pallas_src>
import jax
import jax.numpy as jnp
import numpy as np
from jax.experimental import pallas as pl
from jax.experimental.pallas import tpu as pltpu

CIN = 3          # conv in channels
COUT = 128       # conv out channels
KW = 32          # conv kernel width (kernel height is 1)
HID = 64         # LSTM hidden size
NCLS = 3         # FC output size
SLOPE = 0.1      # LeakyReLU negative slope
WC = 369         # conv output width == MaxPool2d((1, 369)) window
WC_PAD = 376     # conv rows padded to a multiple of 8 (replicate last row)
K_PAD = 128      # padded contraction dim for the conv matmul (CIN*KW = 96 -> 128)
OUT_PAD = 128    # lane-dense FC output width (first NCLS lanes valid)
W_IN = WC + KW - 1   # = 400, required input width for the module's shapes

# Weight-slab row offsets (all multiples of 16 -> bf16-tile aligned).
_R_CONV = 0                      # rows   0:128  -> wconv   (128, 128) in cols 0:128
_R_IH1 = _R_CONV + K_PAD         # rows 128:256  -> wih1    (128, 192)
_R_IH2 = _R_IH1 + COUT           # rows 256:320  -> wih2    ( 64, 192)
_R_FC = _R_IH2 + HID             # rows 320:384  -> wfc     ( 64, 128) in cols 0:128
_R_TOT = _R_FC + HID             # 384
_SLAB_W = 3 * HID                # 192 lanes

# im2col window indices, hoisted to a host-side constant.
_WIN = np.arange(WC)[:, None] + np.arange(KW)[None, :]          # (369, 32)


# ----------------------------- Pallas kernel ------------------------------- #
def fused_kernel(patches_ref, w_ref, b_ref, out_ref):
    """Single grid point, everything resident in VMEM (3 input DMAs total).

    patches_ref: (WC_PAD, K_PAD)  bf16  im2col patches of the LAST sample
    w_ref      : (384, 192)       bf16  packed [wconv | wih1 | wih2 | wfc]
    b_ref      : (8, 192)         f32   row0=bconv, row1=b1, row2=b2, row3=bfc
    out_ref    : (1, OUT_PAD)     f32   lane-dense; first NCLS lanes valid
    """
    biases = b_ref[...]                                  # (8, 192) f32
    bconv = biases[0:1, 0:COUT]                          # (1, 128)
    b1 = biases[1:2, :]                                  # (1, 192)
    b2 = biases[2:3, :]                                  # (1, 192)
    bfc = biases[3:4, 0:OUT_PAD]                         # (1, 128)

    # Conv as ONE aligned bf16 MXU matmul: (376, 128) @ (128, 128) -> f32.
    conv = jnp.dot(patches_ref[...], w_ref[_R_CONV:_R_CONV + K_PAD, 0:COUT],
                   preferred_element_type=jnp.float32)   # (376, 128)

    # MaxPool2d((1, 369)) over the conv width; bias added post-max
    # (per-channel bias commutes with the max). Replicated pad rows are safe.
    feat = jnp.max(conv, axis=0, keepdims=True) + bconv  # (1, 128) f32

    # LeakyReLU(0.1)
    feat = jnp.where(feat >= 0.0, feat, SLOPE * feat)

    # One LSTM step, zero initial state (seq_len == 1):
    #   gates = x @ W_ih^T + (b_ih + b_hh)     (h0 == 0 -> no W_hh term)
    #   c = sigmoid(i) * tanh(g)               (c0 == 0 -> no forget term)
    #   h = sigmoid(o) * tanh(c)
    def lstm_cell(xin, w_igo_bf16, bias):
        gates = jnp.dot(xin.astype(jnp.bfloat16), w_igo_bf16,
                        preferred_element_type=jnp.float32) + bias
        i = jax.nn.sigmoid(gates[:, 0 * HID:1 * HID])
        g = jnp.tanh(gates[:, 1 * HID:2 * HID])
        o = jax.nn.sigmoid(gates[:, 2 * HID:3 * HID])
        return o * jnp.tanh(i * g)

    h1 = lstm_cell(feat, w_ref[_R_IH1:_R_IH1 + COUT, :], b1)   # (1, 64)
    h2 = lstm_cell(h1, w_ref[_R_IH2:_R_IH2 + HID, :], b2)      # (1, 64)

    # FC on out[-1, :, :] (== this sample's hidden state); lane-dense output.
    wfc = w_ref[_R_FC:_R_FC + HID, 0:OUT_PAD]                  # (64, 128)
    out_ref[...] = jnp.dot(h2.astype(jnp.bfloat16), wfc,
                           preferred_element_type=jnp.float32) + bfc


# ------------------------- one-time weight packing -------------------------- #
def prepare_params(params):
    """Init-time only: pack all weights/biases into kernel-ready slabs."""
    # Conv weights -> (K_PAD, COUT), (channel, kw) contraction order.
    wconv = params["conv_w"].reshape(COUT, CIN * KW).T                  # (96, 128)
    wconv = jnp.pad(wconv, ((0, K_PAD - CIN * KW), (0, _SLAB_W - COUT)))  # (128, 192)

    # LSTM weights: keep only [i, g, o] rows (forget gate dead: c0 == 0).
    def igo_w(w):                       # (4*HID, in) -> (in, 3*HID)
        return jnp.concatenate([w[0:HID], w[2 * HID:4 * HID]], axis=0).T

    def igo_b(b_ih, b_hh):              # -> (3*HID,)
        b = b_ih + b_hh
        return jnp.concatenate([b[0:HID], b[2 * HID:4 * HID]])

    wih1 = igo_w(params["lstm_w_ih_l0"])                                # (128, 192)
    wih2 = igo_w(params["lstm_w_ih_l1"])                                # (64, 192)
    wfc = jnp.pad(params["fc_w"].T, ((0, 0), (0, _SLAB_W - NCLS)))      # (64, 192)

    w_slab = jnp.concatenate([wconv, wih1, wih2, wfc],
                             axis=0).astype(jnp.bfloat16)               # (384, 192)

    b_slab = jnp.zeros((8, _SLAB_W), jnp.float32)
    b_slab = b_slab.at[0, :COUT].set(params["conv_b"])
    b_slab = b_slab.at[1, :].set(igo_b(params["lstm_b_ih_l0"], params["lstm_b_hh_l0"]))
    b_slab = b_slab.at[2, :].set(igo_b(params["lstm_b_ih_l1"], params["lstm_b_hh_l1"]))
    b_slab = b_slab.at[3, :NCLS].set(params["fc_b"])
    return w_slab, b_slab


# ------------------------------ per-call path ------------------------------- #
@jax.jit
def lstm_model_forward(x, w_slab, b_slab):
    """x: (B, CIN, 1, W_IN) f32 NCHW. Returns (1, NCLS) like the module."""
    B, cin, H, W = x.shape
    assert cin == CIN and H == 1
    # MaxPool2d((1, 369)) must cover the full conv output width (seq_len == 1).
    assert W - KW + 1 == WC, "input width must be 400 for MaxPool2d((1, 369))"

    # Only out[-1, :, :] is used; samples are independent -> last sample only.
    x_last = x[B - 1, :, 0, :]                                      # (3, 400)

    # im2col: (WC, CIN*KW) in (channel, kw) order to match conv_w layout.
    patches = x_last[:, _WIN]                                       # (3, 369, 32)
    patches = jnp.transpose(patches, (1, 0, 2)).reshape(WC, CIN * KW)
    # Pad rows 369 -> 376 by REPLICATING the last row (max-pool unaffected),
    # zero-pad the contraction dim 96 -> 128, cast to bf16 for the MXU.
    patches = jnp.concatenate(
        [patches, jnp.broadcast_to(patches[-1:], (WC_PAD - WC, CIN * KW))], axis=0)
    patches = jnp.pad(patches, ((0, 0), (0, K_PAD - CIN * KW)))
    patches = patches.astype(jnp.bfloat16)                          # (376, 128)

    vmem = pl.BlockSpec(memory_space=pltpu.MemorySpace.VMEM)
    out = pl.pallas_call(
        fused_kernel,
        out_shape=jax.ShapeDtypeStruct((1, OUT_PAD), jnp.float32),
        in_specs=[vmem, vmem, vmem],
        out_specs=vmem,
    )(patches, w_slab, b_slab)
    return out[:, :NCLS]


# ----------------------- pure-JAX reference (full batch) -------------------- #
def reference_forward(x, params):
    conv = jax.lax.conv_general_dilated(
        x, params["conv_w"], (1, 1), "VALID",
        dimension_numbers=("NCHW", "OIHW", "NCHW"))
    conv = conv + params["conv_b"].reshape(1, COUT, 1, 1)
    pooled = jnp.max(conv, axis=3, keepdims=True)            # MaxPool2d((1, 369))
    act = jnp.where(pooled >= 0, pooled, SLOPE * pooled)     # LeakyReLU(0.1)
    B = x.shape[0]
    seq = act.reshape(B, 1, COUT)                            # (B, seq=1, 128)
    h = seq[:, 0, :]

    def cell(xin, w_ih, b_ih, b_hh):
        g = xin @ w_ih.T + b_ih + b_hh                       # h0 == 0
        i, f, gg, o = jnp.split(g, 4, axis=1)
        c = jax.nn.sigmoid(i) * jnp.tanh(gg)                 # c0 == 0
        return jax.nn.sigmoid(o) * jnp.tanh(c)

    h1 = cell(h, params["lstm_w_ih_l0"], params["lstm_b_ih_l0"], params["lstm_b_hh_l0"])
    h2 = cell(h1, params["lstm_w_ih_l1"], params["lstm_b_ih_l1"], params["lstm_b_hh_l1"])
    last = h2[B - 1:B]                                       # out[-1, :, :]
    return last @ params["fc_w"].T + params["fc_b"]


if __name__ == "__main__":
    key = jax.random.PRNGKey(0)
    B, W = 8, W_IN  # small stand-in batch; W=400 is forced by the module's shapes
    keys = jax.random.split(key, 16)

    def rnd(k, shape, scale=0.05):
        return scale * jax.random.normal(k, shape, dtype=jnp.float32)

    params = {
        "conv_w": rnd(keys[0], (COUT, CIN, 1, KW)),
        "conv_b": rnd(keys[1], (COUT,)),
        "lstm_w_ih_l0": rnd(keys[2], (4 * HID, COUT)),
        "lstm_w_hh_l0": rnd(keys[3], (4 * HID, HID)),   # unused: h0 == 0, seq_len == 1
        "lstm_b_ih_l0": rnd(keys[4], (4 * HID,)),
        "lstm_b_hh_l0": rnd(keys[5], (4 * HID,)),
        "lstm_w_ih_l1": rnd(keys[6], (4 * HID, HID)),
        "lstm_w_hh_l1": rnd(keys[7], (4 * HID, HID)),   # unused: h0 == 0, seq_len == 1
        "lstm_b_ih_l1": rnd(keys[8], (4 * HID,)),
        "lstm_b_hh_l1": rnd(keys[9], (4 * HID,)),
        "fc_w": rnd(keys[10], (NCLS, HID)),
        "fc_b": rnd(keys[11], (NCLS,)),
    }
    x = jax.random.normal(keys[12], (B, CIN, 1, W), dtype=jnp.float32)

    # Init-time packing (hoisted out of the per-call path).
    w_slab, b_slab = jax.block_until_ready(prepare_params(params))

    out = jax.block_until_ready(lstm_model_forward(x, w_slab, b_slab))
    assert out.shape == (1, NCLS)

    ref = reference_forward(x, params)
    # bf16 matmul operands with f32 accumulation -> tolerance loosened vs f32 ref.
    np.testing.assert_allclose(np.asarray(out), np.asarray(ref), rtol=2e-2, atol=2e-3)

    print("KERNEL_OK")
</pallas_src>

<mosaic_0001>
module attributes {stable_mosaic.version = 11 : i64} {
  func.func @fused_kernel(%arg0: memref<376x128xbf16, #tpu.memory_space<vmem>>, %arg1: memref<384x192xbf16, #tpu.memory_space<vmem>>, %arg2: memref<8x192xf32, #tpu.memory_space<vmem>>, %arg3: memref<1x128xf32, #tpu.memory_space<vmem>>) attributes {dimension_semantics = [], scalar_prefetch = 0 : i64, scratch_operands = 0 : i64, tpu.core_type = #tpu.core_type<tc>} {
    %c0 = arith.constant 0 : index
    %c0_0 = arith.constant 0 : index
    %0 = vector.load %arg2[%c0, %c0_0] : memref<8x192xf32, #tpu.memory_space<vmem>>, vector<8x192xf32>
    %1 = vector.extract_strided_slice %0 {offsets = [0, 0], sizes = [1, 128], strides = [1, 1]} : vector<8x192xf32> to vector<1x128xf32>
    %2 = vector.extract_strided_slice %0 {offsets = [1, 0], sizes = [1, 192], strides = [1, 1]} : vector<8x192xf32> to vector<1x192xf32>
    %3 = vector.extract_strided_slice %0 {offsets = [2, 0], sizes = [1, 192], strides = [1, 1]} : vector<8x192xf32> to vector<1x192xf32>
    %4 = vector.extract_strided_slice %0 {offsets = [3, 0], sizes = [1, 128], strides = [1, 1]} : vector<8x192xf32> to vector<1x128xf32>
    %c0_1 = arith.constant 0 : index
    %c0_2 = arith.constant 0 : index
    %5 = vector.load %arg0[%c0_1, %c0_2] : memref<376x128xbf16, #tpu.memory_space<vmem>>, vector<376x128xbf16>
    %c0_3 = arith.constant 0 : index
    %c0_4 = arith.constant 0 : index
    %6 = vector.load %arg1[%c0_3, %c0_4] : memref<384x192xbf16, #tpu.memory_space<vmem>>, vector<128x128xbf16>
    %cst = arith.constant dense<0.000000e+00> : vector<376x128xf32>
    %7 = tpu.matmul %5, %6, %cst {dimension_numbers = #tpu.dot_dimension_numbers<[1], [0], [0], [1], [0, 0, 1, 1], [], []>} : vector<376x128xbf16>, vector<128x128xbf16>, vector<376x128xf32> -> vector<376x128xf32>
    %cst_5 = arith.constant dense<0xFF800000> : vector<128xf32>
    %8 = vector.multi_reduction <maximumf>, %7, %cst_5 [0] : vector<376x128xf32> to vector<128xf32>
    %9 = vector.shape_cast %8 : vector<128xf32> to vector<1x128xf32>
    %10 = arith.addf %9, %1 : vector<1x128xf32>
    %cst_6 = arith.constant 0.000000e+00 : f32
    %11 = vector.broadcast %cst_6 : f32 to vector<1x128xf32>
    %12 = arith.cmpf oge, %10, %11 : vector<1x128xf32>
    %cst_7 = arith.constant 1.000000e-01 : f32
    %13 = vector.broadcast %cst_7 : f32 to vector<1x128xf32>
    %14 = arith.mulf %13, %10 : vector<1x128xf32>
    %15 = arith.select %12, %10, %14 : vector<1x128xi1>, vector<1x128xf32>
    %c128 = arith.constant 128 : index
    %c0_8 = arith.constant 0 : index
    %16 = vector.load %arg1[%c128, %c0_8] : memref<384x192xbf16, #tpu.memory_space<vmem>>, vector<128x192xbf16>
    %17 = arith.truncf %15 : vector<1x128xf32> to vector<1x128xbf16>
    %cst_9 = arith.constant dense<0.000000e+00> : vector<1x192xf32>
    %18 = tpu.matmul %17, %16, %cst_9 {dimension_numbers = #tpu.dot_dimension_numbers<[1], [0], [0], [1], [0, 0, 1, 1], [], []>} : vector<1x128xbf16>, vector<128x192xbf16>, vector<1x192xf32> -> vector<1x192xf32>
    %19 = arith.addf %18, %2 : vector<1x192xf32>
    %20 = vector.extract_strided_slice %19 {offsets = [0, 0], sizes = [1, 64], strides = [1, 1]} : vector<1x192xf32> to vector<1x64xf32>
    %21 = arith.negf %20 : vector<1x64xf32>
    %22 = math.exp %21 : vector<1x64xf32>
    %cst_10 = arith.constant 1.000000e+00 : f32
    %23 = vector.broadcast %cst_10 : f32 to vector<1x64xf32>
    %24 = arith.addf %23, %22 : vector<1x64xf32>
    %25 = arith.divf %23, %24 : vector<1x64xf32>
    %26 = vector.extract_strided_slice %19 {offsets = [0, 64], sizes = [1, 64], strides = [1, 1]} : vector<1x192xf32> to vector<1x64xf32>
    %27 = math.tanh %26 : vector<1x64xf32>
    %28 = vector.extract_strided_slice %19 {offsets = [0, 128], sizes = [1, 64], strides = [1, 1]} : vector<1x192xf32> to vector<1x64xf32>
    %29 = arith.negf %28 : vector<1x64xf32>
    %30 = math.exp %29 : vector<1x64xf32>
    %cst_11 = arith.constant 1.000000e+00 : f32
    %31 = vector.broadcast %cst_11 : f32 to vector<1x64xf32>
    %32 = arith.addf %31, %30 : vector<1x64xf32>
    %33 = arith.divf %31, %32 : vector<1x64xf32>
    %34 = arith.mulf %25, %27 : vector<1x64xf32>
    %35 = math.tanh %34 : vector<1x64xf32>
    %36 = arith.mulf %33, %35 : vector<1x64xf32>
    %c256 = arith.constant 256 : index
    %c0_12 = arith.constant 0 : index
    %37 = vector.load %arg1[%c256, %c0_12] : memref<384x192xbf16, #tpu.memory_space<vmem>>, vector<64x192xbf16>
    %38 = arith.truncf %36 : vector<1x64xf32> to vector<1x64xbf16>
    %cst_13 = arith.constant dense<0.000000e+00> : vector<1x192xf32>
    %39 = tpu.matmul %38, %37, %cst_13 {dimension_numbers = #tpu.dot_dimension_numbers<[1], [0], [0], [1], [0, 0, 1, 1], [], []>} : vector<1x64xbf16>, vector<64x192xbf16>, vector<1x192xf32> -> vector<1x192xf32>
    %40 = arith.addf %39, %3 : vector<1x192xf32>
    %41 = vector.extract_strided_slice %40 {offsets = [0, 0], sizes = [1, 64], strides = [1, 1]} : vector<1x192xf32> to vector<1x64xf32>
    %42 = arith.negf %41 : vector<1x64xf32>
    %43 = math.exp %42 : vector<1x64xf32>
    %cst_14 = arith.constant 1.000000e+00 : f32
    %44 = vector.broadcast %cst_14 : f32 to vector<1x64xf32>
    %45 = arith.addf %44, %43 : vector<1x64xf32>
    %46 = arith.divf %44, %45 : vector<1x64xf32>
    %47 = vector.extract_strided_slice %40 {offsets = [0, 64], sizes = [1, 64], strides = [1, 1]} : vector<1x192xf32> to vector<1x64xf32>
    %48 = math.tanh %47 : vector<1x64xf32>
    %49 = vector.extract_strided_slice %40 {offsets = [0, 128], sizes = [1, 64], strides = [1, 1]} : vector<1x192xf32> to vector<1x64xf32>
    %50 = arith.negf %49 : vector<1x64xf32>
    %51 = math.exp %50 : vector<1x64xf32>
    %cst_15 = arith.constant 1.000000e+00 : f32
    %52 = vector.broadcast %cst_15 : f32 to vector<1x64xf32>
    %53 = arith.addf %52, %51 : vector<1x64xf32>
    %54 = arith.divf %52, %53 : vector<1x64xf32>
    %55 = arith.mulf %46, %48 : vector<1x64xf32>
    %56 = math.tanh %55 : vector<1x64xf32>
    %57 = arith.mulf %54, %56 : vector<1x64xf32>
    %c320 = arith.constant 320 : index
    %c0_16 = arith.constant 0 : index
    %58 = vector.load %arg1[%c320, %c0_16] : memref<384x192xbf16, #tpu.memory_space<vmem>>, vector<64x128xbf16>
    %59 = arith.truncf %57 : vector<1x64xf32> to vector<1x64xbf16>
    %cst_17 = arith.constant dense<0.000000e+00> : vector<1x128xf32>
    %60 = tpu.matmul %59, %58, %cst_17 {dimension_numbers = #tpu.dot_dimension_numbers<[1], [0], [0], [1], [0, 0, 1, 1], [], []>} : vector<1x64xbf16>, vector<64x128xbf16>, vector<1x128xf32> -> vector<1x128xf32>
    %61 = arith.addf %60, %4 : vector<1x128xf32>
    %c0_18 = arith.constant 0 : index
    %c0_19 = arith.constant 0 : index
    %62 = vector.load %arg3[%c0_18, %c0_19] : memref<1x128xf32, #tpu.memory_space<vmem>>, vector<1x128xf32>
    tpu.vector_store %arg3[%c0_18, %c0_19], %61 {strides = array<i32>} : memref<1x128xf32, #tpu.memory_space<vmem>>, vector<1x128xf32>,
    return
  }
}

</mosaic_0001>

<bundles_post_ra>
// kernel: lstm_model_forward.1
= control target key start
LH: loop header
LB: loop body
LE: loop exit
PB: predicated region body
PF: predicated region fallthrough
CT: control target
= control target key end

     0   :  { %s1454_s0 = inlined_call_operand.vmem [shape: bf16[376,128], index: 0, kind: input, shape index: {}]   ;;  %s1455_s1 = inlined_call_operand.vmem [shape: bf16[384,192], index: 1, kind: input, shape index: {}]   ;;  %s1456_s2 = inlined_call_operand.vmem [shape: f32[8,192], index: 2, kind: input, shape index: {}]   ;;  %s1457_s3 = inlined_call_operand.hbm [shape: f32[1,128], index: 3, kind: output, shape index: {}]  }
   0x1   :  { %v1110_v0 = vld [vmem:[%s1455_s1 + $0x70] ss:$8 sps:$4 sm:$0xff]   ;;  %v1111_v1 = vld [vmem:[%s1455_s1 + $0x60] ss:$8 sps:$4 sm:$0xff]  }
   0x2   :  { %1029 = vmatprep.subr.bf16.mxu0 %v1110_v0  ;;  %v1112_v2 = vld [vmem:[%s1455_s1 + $0x50] ss:$8 sps:$4 sm:$0xff]   ;;  %v1113_v3 = vld [vmem:[%s1455_s1 + $0x40] ss:$8 sps:$4 sm:$0xff]  }
   0x3   :  { %1030 = vmatpush3.bf16.msra.mxu0 %v1110_v0  ;;  %v1118_v4 = vld [vmem:[%s1454_s0] sm:$0xff]   ;;  %v1114_v5 = vld [vmem:[%s1455_s1 + $0x30] ss:$8 sps:$4 sm:$0xff]   ;;  %v1119_v9 = vld [vmem:[%s1454_s0 + $0x8] sm:$0xff]  }
   0x4   :  { %1031 = vmatprep.subr.bf16.mxu0 %v1111_v1  ;;  %1045 = vmatprep.mubr.bf16.mxu0 %v1118_v4  ;;  %v1115_v6 = vld [vmem:[%s1455_s1 + $0x20] ss:$8 sps:$4 sm:$0xff]   ;;  %v1116_v7 = vld [vmem:[%s1455_s1 + $0x10] ss:$8 sps:$4 sm:$0xff]  }
   0x5   :  { %v1117_v8 = vld [vmem:[%s1455_s1] ss:$8 sps:$4 sm:$0xff]   ;;  %v1120_v10 = vld [vmem:[%s1454_s0 + $0x10] sm:$0xff]   ;;  %v1121_v11 = vld [vmem:[%s1454_s0 + $0x18] sm:$0xff]  }
   0x6   :  { %v1122_v12 = vld [vmem:[%s1454_s0 + $0x20] sm:$0xff]  }
   0x7   :  { %1032 = vmatpush3.bf16.msra.mxu0 %v1111_v1 }
   0x8   :  { %1033 = vmatprep.subr.bf16.mxu0 %v1112_v2 }
   0xb   :  { %1034 = vmatpush3.bf16.msra.mxu0 %v1112_v2 }
   0xc   :  { %1035 = vmatprep.subr.bf16.mxu0 %v1113_v3 }
   0xf   :  { %1036 = vmatpush3.bf16.msra.mxu0 %v1113_v3 }
  0x10   :  { %1037 = vmatprep.subr.bf16.mxu0 %v1114_v5 }
  0x13   :  { %1038 = vmatpush3.bf16.msra.mxu0 %v1114_v5 }
  0x14   :  { %1039 = vmatprep.subr.bf16.mxu0 %v1115_v6 }
  0x17   :  { %1040 = vmatpush3.bf16.msra.mxu0 %v1115_v6 }
  0x18   :  { %1041 = vmatprep.subr.bf16.mxu0 %v1116_v7 }
  0x1b   :  { %1042 = vmatpush3.bf16.msra.mxu0 %v1116_v7 }
  0x1c   :  { %1043 = vmatprep.subr.bf16.mxu0 %v1117_v8 }
  0x1f   :  { %1044 = vmatpush3.bf16.msra.mxu0 %v1117_v8 }
  0x22   :  { %1046 = vmatmul.mubr.bf16.vlgmr.msra.gmra.mxu0 %v1119_v9 }
  0x23   :  { %1049 = vmatprep.mubr.bf16.mxu0 %v1120_v10 }
  0x2a   :  { %1050 = vmatmul.mubr.bf16.gmra.mxu0 %v1121_v11 }
  0x2b   :  { %8 = vsyncpa [#allocation3], 0  ;;  %1053 = vmatprep.mubr.bf16.mxu0 %v1122_v12  ;;  %v1123_v13 = vld [vmem:[%s1454_s0 + $0x28] sm:$0xff]   ;;  %v1124_v14 = vld [vmem:[%s1454_s0 + $0x30] sm:$0xff]   ;;  %v1228_v48 = vmov 0   ;;  %s1229_s14 = smov 64  }
  0x2c   :  { %v1125_v15 = vld [vmem:[%s1454_s0 + $0x38] sm:$0xff]   ;;  %v1126_v16 = vld [vmem:[%s1454_s0 + $0x40] sm:$0xff]   ;;  %v1127_v17 = vld [vmem:[%s1454_s0 + $0x48] sm:$0xff]   ;;  %686 = vmatprep.mubr.bf16.mxu1 %v1228_v48  ;;  %vm768_vm1 = vcmask 523264   ;;  %vm1231_vm2 = vmmov 0  }
  0x2d   :  { %v1128_v18 = vld [vmem:[%s1454_s0 + $0x50] sm:$0xff]   ;;  %v1129_v19 = vld [vmem:[%s1454_s0 + $0x58] sm:$0xff]   ;;  %v1130_v20 = vld [vmem:[%s1454_s0 + $0x60] sm:$0xff]  }
  0x2e   :  { %v1131_v21 = vld [vmem:[%s1454_s0 + $0x68] sm:$0xff]   ;;  %v1132_v22 = vld [vmem:[%s1454_s0 + $0x70] sm:$0xff]   ;;  %v1133_v23 = vld [vmem:[%s1454_s0 + $0x78] sm:$0xff]  }
  0x2f   :  { %v1134_v24 = vld [vmem:[%s1454_s0 + $0x80] sm:$0xff]   ;;  %v1135_v25 = vld [vmem:[%s1454_s0 + $0x88] sm:$0xff]   ;;  %v1136_v26 = vld [vmem:[%s1454_s0 + $0x90] sm:$0xff]  }
  0x30   :  { %v1137_v27 = vld [vmem:[%s1454_s0 + $0x98] sm:$0xff]   ;;  %v1138_v28 = vld [vmem:[%s1454_s0 + $0xa0] sm:$0xff]   ;;  %v1139_v29 = vld [vmem:[%s1454_s0 + $0xa8] sm:$0xff]  }
  0x31   :  { %v1140_v30 = vld [vmem:[%s1454_s0 + $0xb0] sm:$0xff]   ;;  %v1141_v31 = vld [vmem:[%s1454_s0 + $0xb8] ss:$0 sps:$4 sm:$0xff]   ;;  %v1145_v34 = vld [vmem:[%s1455_s1 + $0xe4] ss:$8 sps:$4 sm:$0xff]  }
  0x32   :  { %1054 = vmatmul.mubr.bf16.gmra.mxu0 %v1123_v13  ;;  %v1142_v32 = vld [vmem:[%s1455_s1 + $0xf4] ss:$8 sps:$4 sm:$0xff]   ;;  %v1144_v33 = vld [vmem:[%s1455_s1 + $0xf0] ss:$8 sps:$4 sm:$0xff]   ;;  %v1147_v35 = vld [vmem:[%s1455_s1 + $0xe0] ss:$8 sps:$4 sm:$0xff]  }
  0x33   :  { %1057 = vmatprep.mubr.bf16.mxu0 %v1124_v14  ;;  %654 = vmatprep.subr.bf16.mxu1 %v1142_v32  ;;  %v1148_v36 = vld [vmem:[%s1455_s1 + $0xd4] ss:$8 sps:$4 sm:$0xff]   ;;  %v1150_v37 = vld [vmem:[%s1455_s1 + $0xd0] ss:$8 sps:$4 sm:$0xff]   ;;  %v1151_v38 = vld [vmem:[%s1455_s1 + $0xc4] ss:$8 sps:$4 sm:$0xff]  }
  0x34   :  { %655 = vmatpush1.bf16.msra.mxu1 %v1144_v33  ;;  %v1153_v39 = vld [vmem:[%s1455_s1 + $0xc0] ss:$8 sps:$4 sm:$0xff]   ;;  %v1154_v40 = vld [vmem:[%s1455_s1 + $0xb4] ss:$8 sps:$4 sm:$0xff]   ;;  %v1156_v41 = vld [vmem:[%s1455_s1 + $0xb0] ss:$8 sps:$4 sm:$0xff]  }
  0x35   :  { %656 = vmatprep.subr.bf16.mxu1 %v1145_v34  ;;  %v1157_v42 = vld [vmem:[%s1455_s1 + $0xa4] ss:$8 sps:$4 sm:$0xff]   ;;  %v1159_v43 = vld [vmem:[%s1455_s1 + $0xa0] ss:$8 sps:$4 sm:$0xff]   ;;  %v1160_v44 = vld [vmem:[%s1455_s1 + $0x94] ss:$8 sps:$4 sm:$0xff]  }
  0x36   :  { %v1162_v45 = vld [vmem:[%s1455_s1 + $0x90] ss:$8 sps:$4 sm:$0xff]   ;;  %v1163_v46 = vld [vmem:[%s1455_s1 + $0x84] ss:$8 sps:$4 sm:$0xff]   ;;  %v1165_v47 = vld [vmem:[%s1455_s1 + $0x80] ss:$8 sps:$4 sm:$0xff]  }
  0x38   :  { %657 = vmatpush1.bf16.msra.mxu1 %v1147_v35 }
  0x39   :  { %658 = vmatprep.subr.bf16.mxu1 %v1148_v36 }
  0x3a   :  { %1058 = vmatmul.mubr.bf16.gmra.mxu0 %v1125_v15 }
  0x3b   :  { %1061 = vmatprep.mubr.bf16.mxu0 %v1126_v16 }
  0x3c   :  { %659 = vmatpush1.bf16.msra.mxu1 %v1150_v37 }
  0x3d   :  { %660 = vmatprep.subr.bf16.mxu1 %v1151_v38 }
  0x40   :  { %661 = vmatpush1.bf16.msra.mxu1 %v1153_v39 }
  0x41   :  { %662 = vmatprep.subr.bf16.mxu1 %v1154_v40 }
  0x42   :  { %1062 = vmatmul.mubr.bf16.gmra.mxu0 %v1127_v17 }
  0x43   :  { %1065 = vmatprep.mubr.bf16.mxu0 %v1128_v18 }
  0x44   :  { %663 = vmatpush1.bf16.msra.mxu1 %v1156_v41 }
  0x45   :  { %664 = vmatprep.subr.bf16.mxu1 %v1157_v42 }
  0x48   :  { %665 = vmatpush1.bf16.msra.mxu1 %v1159_v43 }
  0x49   :  { %666 = vmatprep.subr.bf16.mxu1 %v1160_v44 }
  0x4a   :  { %1066 = vmatmul.mubr.bf16.gmra.mxu0 %v1129_v19 }
  0x4b   :  { %1069 = vmatprep.mubr.bf16.mxu0 %v1130_v20 }
  0x4c   :  { %667 = vmatpush1.bf16.msra.mxu1 %v1162_v45 }
  0x4d   :  { %668 = vmatprep.subr.bf16.mxu1 %v1163_v46 }
  0x50   :  { %669 = vmatpush1.bf16.msra.mxu1 %v1165_v47 }
  0x52   :  { %1070 = vmatmul.mubr.bf16.gmra.mxu0 %v1131_v21 }
  0x53   :  { %1073 = vmatprep.mubr.bf16.mxu0 %v1132_v22 }
  0x5a   :  { %1074 = vmatmul.mubr.bf16.gmra.mxu0 %v1133_v23 }
  0x5b   :  { %1077 = vmatprep.mubr.bf16.mxu0 %v1134_v24 }
  0x62   :  { %1078 = vmatmul.mubr.bf16.gmra.mxu0 %v1135_v25 }
  0x63   :  { %1081 = vmatprep.mubr.bf16.mxu0 %v1136_v26 }
  0x6a   :  { %1082 = vmatmul.mubr.bf16.gmra.mxu0 %v1137_v27 }
  0x6b   :  { %1085 = vmatprep.mubr.bf16.mxu0 %v1138_v28 }
  0x72   :  { %1086 = vmatmul.mubr.bf16.gmra.mxu0 %v1139_v29 }
  0x73   :  { %1089 = vmatprep.mubr.bf16.mxu0 %v1140_v30 }
  0x7a   :  { %1090 = vmatmul.mubr.bf16.gmra.mxu0 %v1141_v31 }
  0xe2   :  { %v1047_v49 = vpop.f32.mrf.mxu0 }
  0xe4   :  { %v305_v50 = vpop.f32.mrf.mxu0 }
  0xe6   :  { %v1048_v51 = vpop.f32.mrf.mxu0 }
  0xe8   :  { %v308_v52 = vpop.f32.mrf.mxu0 }
  0xea   :  { %v1051_v53 = vpop.f32.mrf.mxu0 }
  0xeb   :  { %v497_v54 = vmax.f32 %v1047_v49, %v1051_v53 }
  0xec   :  { %v321_v55 = vpop.f32.mrf.mxu0 }
  0xed   :  { %v495_v56 = vmax.f32 %v305_v50, %v321_v55 }
  0xee   :  { %v1052_v57 = vpop.f32.mrf.mxu0 }
  0xef   :  { %v498_v58 = vmax.f32 %v1048_v51, %v1052_v57 }
  0xf0   :  { %v324_v59 = vpop.f32.mrf.mxu0 }
  0xf1   :  { %v496_v29 = vmax.f32 %v308_v52, %v324_v59 }
  0xf2   :  { %v1055_v60 = vpop.f32.mrf.mxu0 }
  0xf3   :  { %v501_v24 = vmax.f32 %v497_v54, %v1055_v60 }
  0xf4   :  { %v337_v61 = vpop.f32.mrf.mxu0 }
  0xf5   :  { %v499_v33 = vmax.f32 %v495_v56, %v337_v61 }
  0xf6   :  { %v1056_v62 = vpop.f32.mrf.mxu0 }
  0xf7   :  { %v502_v26 = vmax.f32 %v498_v58, %v1056_v62 }
  0xf8   :  { %v340_v63 = vpop.f32.mrf.mxu0 }
  0xf9   :  { %v500_v34 = vmax.f32 %v496_v29, %v340_v63 }
  0xfa   :  { %v1059_v0 = vpop.f32.mrf.mxu0 }
  0xfb   :  { %v505_v27 = vmax.f32 %v501_v24, %v1059_v0 }
  0xfc   :  { %v353_v1 = vpop.f32.mrf.mxu0 }
  0xfd   :  { %v503_v38 = vmax.f32 %v499_v33, %v353_v1  ;;  %v1166_v33 = vld [vmem:[%s1455_s1 + $0x130] ss:$8 sps:$4 sm:$0xff]  }
  0xfe   :  { %v1060_v2 = vpop.f32.mrf.mxu0 }
  0xff   :  { %v506_v30 = vmax.f32 %v502_v26, %v1060_v2 }
 0x100   :  { %v356_v3 = vpop.f32.mrf.mxu0 }
 0x101   :  { %v504_v39 = vmax.f32 %v500_v34, %v356_v3  ;;  %v1168_v34 = vld [vmem:[%s1455_s1 + $0x134] ss:$8 sps:$4 sm:$0xff]  }
 0x102   :  { %v1063_v4 = vpop.f32.mrf.mxu0  ;;  %780 = vmatprep.subr.bf16.mxu1 %v1168_v34 }
 0x103   :  { %v509_v31 = vmax.f32 %v505_v27, %v1063_v4 }
 0x104   :  { %v369_v5 = vpop.f32.mrf.mxu0 }
 0x105   :  { %v507_v43 = vmax.f32 %v503_v38, %v369_v5  ;;  %v1177_v38 = vld [vmem:[%s1455_s1 + $0x104] ss:$8 sps:$4 sm:$0xff]  }
 0x106   :  { %v1064_v6 = vpop.f32.mrf.mxu0 }
 0x107   :  { %v510_v35 = vmax.f32 %v506_v30, %v1064_v6 }
 0x108   :  { %v372_v7 = vpop.f32.mrf.mxu0 }
 0x109   :  { %v508_v44 = vmax.f32 %v504_v39, %v372_v7 }
 0x10a   :  { %v1067_v8 = vpop.f32.mrf.mxu0 }
 0x10b   :  { %v513_v36 = vmax.f32 %v509_v31, %v1067_v8 }
 0x10c   :  { %v385_v9 = vpop.f32.mrf.mxu0 }
 0x10d   :  { %v511_v49 = vmax.f32 %v507_v43, %v385_v9 }
 0x10e   :  { %v1068_v10 = vpop.f32.mrf.mxu0 }
 0x10f   :  { %v514_v40 = vmax.f32 %v510_v35, %v1068_v10  ;;  %v1169_v35 = vld [vmem:[%s1455_s1 + $0x120] ss:$8 sps:$4 sm:$0xff]  }
 0x110   :  { %v388_v11 = vpop.f32.mrf.mxu0 }
 0x111   :  { %v512_v50 = vmax.f32 %v508_v44, %v388_v11 }
 0x112   :  { %v1071_v12 = vpop.f32.mrf.mxu0 }
 0x113   :  { %v517_v41 = vmax.f32 %v513_v36, %v1071_v12  ;;  %v1174_v36 = vld [vmem:[%s1455_s1 + $0x114] ss:$8 sps:$4 sm:$0xff]  }
 0x114   :  { %v401_v13 = vpop.f32.mrf.mxu0 }
 0x115   :  { %v515_v54 = vmax.f32 %v511_v49, %v401_v13 }
 0x116   :  { %v1072_v14 = vpop.f32.mrf.mxu0 }
 0x117   :  { %v518_v45 = vmax.f32 %v514_v40, %v1072_v14  ;;  %v1175_v40 = vld [vmem:[%s1455_s1 + $0x100] ss:$8 sps:$4 sm:$0xff]  }
 0x118   :  { %v404_v15 = vpop.f32.mrf.mxu0 }
 0x119   :  { %v516_v55 = vmax.f32 %v512_v50, %v404_v15 }
 0x11a   :  { %v1075_v16 = vpop.f32.mrf.mxu0 }
 0x11b   :  { %v521_v46 = vmax.f32 %v517_v41, %v1075_v16 }
 0x11c   :  { %v417_v17 = vpop.f32.mrf.mxu0 }
 0x11d   :  { %v519_v59 = vmax.f32 %v515_v54, %v417_v17 }
 0x11e   :  { %v1076_v18 = vpop.f32.mrf.mxu0 }
 0x11f   :  { %v522_v51 = vmax.f32 %v518_v45, %v1076_v18 }
 0x120   :  { %v420_v19 = vpop.f32.mrf.mxu0 }
 0x121   :  { %v520_v60 = vmax.f32 %v516_v55, %v420_v19 }
 0x122   :  { %v1079_v20 = vpop.f32.mrf.mxu0 }
 0x123   :  { %v525_v52 = vmax.f32 %v521_v46, %v1079_v20 }
 0x124   :  { %v433_v21 = vpop.f32.mrf.mxu0 }
 0x125   :  { %v523_v0 = vmax.f32 %v519_v59, %v433_v21  ;;  %v1401_v21 = vld [vmem:[%s1456_s2] sm:$0xff] }
 0x126   :  { %v1080_v22 = vpop.f32.mrf.mxu0  ;;  %v650_v27 = vrot.slane %v1401_v21, 1 }
 0x127   :  { %v526_v56 = vmax.f32 %v522_v51, %v1080_v22 }
 0x128   :  { %v436_v23 = vpop.f32.mrf.mxu0 }
 0x129   :  { %v524_v1 = vmax.f32 %v520_v60, %v436_v23 }
 0x12a   :  { %v1083_v25 = vpop.f32.mrf.mxu0 }
 0x12b   :  { %v529_v57 = vmax.f32 %v525_v52, %v1083_v25 }
 0x12c   :  { %v449_v28 = vpop.f32.mrf.mxu0 }
 0x12d   :  { %v527_v5 = vmax.f32 %v523_v0, %v449_v28  ;;  %v1178_v0 = vld [vmem:[%s1455_s1 + $0x170] ss:$8 sps:$4 sm:$0xff]  }
 0x12e   :  { %v1084_v32 = vpop.f32.mrf.mxu0 }
 0x12f   :  { %v530_v61 = vmax.f32 %v526_v56, %v1084_v32 }
 0x130   :  { %v452_v37 = vpop.f32.mrf.mxu0 }
 0x131   :  { %v528_v6 = vmax.f32 %v524_v1, %v452_v37  ;;  %v1172_v37 = vld [vmem:[%s1455_s1 + $0x110] ss:$8 sps:$4 sm:$0xff]   ;;  %v1230_v1 = vmov 0.0  }
 0x132   :  { %v1087_v42 = vpop.f32.mrf.mxu0 }
 0x133   :  { %v533_v62 = vmax.f32 %v529_v57, %v1087_v42  ;;  %v17_v42 = vld [vmem:[%s1456_s2 + $0x8] sm:$0xff] }
 0x134   :  { %v465_v47 = vpop.f32.mrf.mxu0  ;;  %v651_v43 = vrot.slane %v17_v42, 1 }
 0x135   :  { %v531_v9 = vmax.f32 %v527_v5, %v465_v47  ;;  %v1181_v5 = vld [vmem:[%s1455_s1 + $0x140] ss:$8 sps:$4 sm:$0xff]  }
 0x136   :  { %v1088_v53 = vpop.f32.mrf.mxu0 }
 0x137   :  { %v534_v2 = vmax.f32 %v530_v61, %v1088_v53 }
 0x138   :  { %v468_v58 = vpop.f32.mrf.mxu0 }
 0x139   :  { %v532_v10 = vmax.f32 %v528_v6, %v468_v58  ;;  %v764_v58 = vrot.slane %v1401_v21, 2 }
 0x13a   :  { %v1091_v63 = vpop.f32.mrf.mxu0 }
 0x13b   :  { %v537_v3 = vmax.f32 %v533_v62, %v1091_v63 }
 0x13c   :  { %v481_v4 = vpop.f32.mrf.mxu0 }
 0x13d   :  { %v539_v7 = vmax.f32 %v537_v3, %v534_v2  ;;  %v535_v12 = vmax.f32 %v531_v9, %v481_v4  ;;  %v1179_v2 = vld [vmem:[%s1455_s1 + $0x160] ss:$8 sps:$4 sm:$0xff]   ;;  %v1180_v3 = vld [vmem:[%s1455_s1 + $0x150] ss:$8 sps:$4 sm:$0xff]  }
 0x13e   :  { %v1092_v8 = vpop.f32.mrf.mxu0 }
 0x140   :  { %v484_v11 = vpop.f32.mrf.mxu0 }
 0x141   :  { %v536_v13 = vmax.f32 %v532_v10, %v484_v11 }
 0x143   :  { %v538_v14 = vmax.f32 %v535_v12, %v536_v13 }
 0x145   :  { %v540_v15 = vmax.f32 %v538_v14, %v539_v7  ;;  %v765_v7 = vrot.slane %v17_v42, 2 }
 0x147   :  { %v541_v16 = vrot.slane %v540_v15, 4 }
 0x149   :  { %v542_v17 = vmax.f32 %v540_v15, %v541_v16 }
 0x14b   :  { %v543_v18 = vrot.slane %v542_v17, 2 }
 0x14d   :  { %v544_v19 = vmax.f32 %v542_v17, %v543_v18 }
 0x14f   :  { %v545_v20 = vrot.slane %v544_v19, 1 }
 0x151   :  { %v546_v22 = vmax.f32 %v544_v19, %v545_v20 }
 0x153   :  { %v547_v23 = vadd.f32 %v546_v22, %v1401_v21  ;;  %v866_v22 = vrot.slane %v1401_v21, 3 }
 0x155   :  { %vm548_vm0 = vcmp.ge.f32.partialorder %v547_v23, 0.0  ;;  %v549_v24 = vmul.f32 0.1, %v547_v23 }
 0x157   :  { %v550_v25 = vsel %vm548_vm0, %v547_v23, %v549_v24 }
 0x158   :  { %v567_v26 = vpack.c.bf16 %v550_v25, %v550_v25 }
 0x15a   :  { %687 = vmatmul.mubr.bf16.vlgmr.msra.gmra.mxu1 %v567_v26 }
 0x15b   :  { %804 = vmatprep.mubr.bf16.mxu1 %v1228_v48  ;;  %v1171_v48 = vld [vmem:[%s1455_s1 + $0x124] ss:$8 sps:$4 sm:$0xff]   ;;  %781 = vmatpush1.bf16.msra.mxu1 %v1166_v33  ;;  %s1232_s1 = smov [#allocation2]  }
 0x15c   :  { %782 = vmatprep.subr.bf16.mxu1 %v1171_v48  ;;  %s918_s26 = sshll.u32 %s1232_s1, 4  ;;  %s919_s26 = int_to_ptr.vmem [resolvable:$true] %s918_s26 }
 0x15d   :  { %s1206_s27 = scalar_lea.vmem %s919_s26, 16  ;;  %s1210_s28 = scalar_lea.vmem %s919_s26, 32 }
 0x15e   :  { %p1207_p0 = scmp.ne.s32.totalorder %s919_s26, %s1206_s27  ;;  %p1211_p1 = scmp.lt.s32.totalorder %s919_s26, %s919_s26 }
 0x15f   :  { %783 = vmatpush1.bf16.msra.mxu1 %v1169_v35  ;;  %p1212_p2 = scmp.lt.s32.totalorder %s1210_s28, %s1206_s27 }
 0x160   :  { %784 = vmatprep.subr.bf16.mxu1 %v1174_v36 }
 0x161   :  { %p1213_p3 = por %p1212_p2, %p1211_p1 }
 0x163   :  { %785 = vmatpush1.bf16.msra.mxu1 %v1172_v37  ;;  %p1214_p4 = pnand %p1213_p3, %p1207_p0 }
 0x164   :  { %786 = vmatprep.subr.bf16.mxu1 %v1177_v38 }
 0x167   :  { %787 = vmatpush1.bf16.msra.mxu1 %v1175_v40 }
 0x168   :  { %1093 = vmatprep.subr.bf16.mxu1 %v1230_v1 }
 0x21a   :  { %v688_v28 = vpop.f32.mrf.mxu1 }
 0x21b   :  { %v689_v29 = vadd.f32 %v688_v28, %v650_v27 }
 0x21c   :  { %v690_v30 = vpop.f32.mrf.mxu1 }
 0x21d   :  { %1182 = vtanh.f32 %v689_v29  ;;  %v974_v41 = vmul.f32 -1.442695, %v689_v29  ;;  %v691_v44 = vadd.f32 %v690_v30, %v651_v43 }
 0x21e   :  { %v692_v31 = vpop.f32.mrf.mxu1 }
 0x21f   :  { %1184 = vpow2.f32 %v974_v41  ;;  %v975_v45 = vmul.f32 -1.442695, %v691_v44 }
 0x220   :  { %v693_v32 = vpop.f32.mrf.mxu1 }
 0x221   :  { %1186 = vpow2.f32 %v975_v45 }
 0x22a   :  { %v1183_v39 = vpop.eup %1182 }
 0x22b   :  { %709 = vrot.lane.b32.xlu0 %v1183_v39, %s1229_s14 }
 0x22c   :  { %v1185_v46 = vpop.eup %1184 }
 0x22d   :  { %v698_v47 = vadd.f32 1.0, %v1185_v46 }
 0x22e   :  { %v1187_v49 = vpop.eup %1186 }
 0x22f   :  { %1188 = vrcp.f32 %v698_v47  ;;  %v705_v50 = vadd.f32 1.0, %v1187_v49 }
 0x231   :  { %1190 = vrcp.f32 %v705_v50 }
 0x23c   :  { %v1189_v51 = vpop.eup %1188 }
 0x23e   :  { %v1191_v54 = vpop.eup %1190 }
 0x29d   :  { %v710_v52 = vpop.permute.xlu0 %709 }
 0x29e   :  { %v712_v53 = vmul.f32 %v1189_v51, %v710_v52 }
 0x2a0   :  { %1192 = vtanh.f32 %v712_v53 }
 0x2ad   :  { %v1193_v55 = vpop.eup %1192 }
 0x2ae   :  { %v714_v56 = vmul.f32 %v1193_v55, %v1191_v54 }
 0x2b0   :  { %v723_v57 = vpack.c.bf16 %v714_v56, %v714_v56 }
 0x2b2   :  { %984 = vmatmul.mubr.msk.bf16.vlgmr.msra.gmra.mxu1 %vm768_vm1, %v723_v57 }
 0x2b3   :  { %1101 = vmatprep.mubr.msk.bf16.mxu1 %vm1231_vm2, %v1230_v1  ;;  %1094 = vmatpush3.bf16.msra.mxu1 %v1178_v0 }
 0x2b4   :  { %1095 = vmatprep.subr.bf16.mxu1 %v1230_v1 }
 0x2b7   :  { %1096 = vmatpush3.bf16.msra.mxu1 %v1179_v2 }
 0x2b8   :  { %1097 = vmatprep.subr.bf16.mxu1 %v1230_v1 }
 0x2bb   :  { %1098 = vmatpush3.bf16.msra.mxu1 %v1180_v3 }
 0x2bc   :  { %1099 = vmatprep.subr.bf16.mxu1 %v1230_v1 }
 0x2bf   :  { %1100 = vmatpush3.bf16.msra.mxu1 %v1181_v5 }
 0x372   :  { %v806_v59 = vpop.f32.mrf.mxu1 }
 0x373   :  { %v807_v60 = vadd.f32 %v806_v59, %v764_v58 }
 0x374   :  { %v808_v61 = vpop.f32.mrf.mxu1 }
 0x375   :  { %1194 = vtanh.f32 %v807_v60  ;;  %v985_v6 = vmul.f32 -1.442695, %v807_v60  ;;  %v809_v8 = vadd.f32 %v808_v61, %v765_v7 }
 0x376   :  { %v810_v62 = vpop.f32.mrf.mxu1 }
 0x377   :  { %1196 = vpow2.f32 %v985_v6  ;;  %v986_v9 = vmul.f32 -1.442695, %v809_v8 }
 0x378   :  { %v811_v63 = vpop.f32.mrf.mxu1 }
 0x379   :  { %1198 = vpow2.f32 %v986_v9 }
 0x382   :  { %v1195_v4 = vpop.eup %1194 }
 0x383   :  { %827 = vrot.lane.b32.xlu0 %v1195_v4, %s1229_s14 }
 0x384   :  { %v1197_v10 = vpop.eup %1196 }
 0x385   :  { %v816_v11 = vadd.f32 1.0, %v1197_v10 }
 0x386   :  { %v1199_v12 = vpop.eup %1198 }
 0x387   :  { %1200 = vrcp.f32 %v816_v11  ;;  %v823_v13 = vadd.f32 1.0, %v1199_v12 }
 0x389   :  { %1202 = vrcp.f32 %v823_v13 }
 0x394   :  { %v1201_v14 = vpop.eup %1200 }
 0x396   :  { %v1203_v17 = vpop.eup %1202 }
 0x3f5   :  { %v828_v15 = vpop.permute.xlu0 %827 }
 0x3f6   :  { %v830_v16 = vmul.f32 %v1201_v14, %v828_v15 }
 0x3f8   :  { %1204 = vtanh.f32 %v830_v16 }
 0x405   :  { %v1205_v18 = vpop.eup %1204 }
 0x406   :  { %v832_v19 = vmul.f32 %v1205_v18, %v1203_v17 }
 0x408   :  { %v841_v20 = vpack.c.bf16 %v832_v19, %v832_v19 }
 0x40a   :  { %1102 = vmatmul.mubr.msk.bf16.vlgmr.msra.gmra.mxu1 %vm768_vm1, %v841_v20 }
 0x4ca   :  { %v905_v23 = vpop.f32.mrf.mxu1 }
 0x4cb   :  { %v906_v24 = vadd.f32 %v905_v23, %v866_v22 }
 0x4cc   :  { %v1103_v25 = vpop.f32.mrf.mxu1 }
 0x4cd   :  { %911 = vst [vmem:[#allocation2] sm:$0x1] %v906_v24 }
 0x4ce   :  { %v908_v26 = vpop.f32.mrf.mxu1 }
 0x4cf   :  { %1217 = shalt.err (!%p1214_p4)
}
 0x4d0   :  { %921 = dma.vmem_to_hbm [thread:$0]  %s919_s26, 16, %s1457_s3, [#allocation3]   ;;  %v1104_v21 = vpop.f32.mrf.mxu1 }
 0x4d1   :  { %1226 = dma.done.wait [#allocation3], 16  }
 0x4d2   :  { %1227 = vsyncadd [#allocation3], 4294967280 }
 0x4d3   :  { %925 = vsyncpa [#allocation3], 1 }

</bundles_post_ra>
